<compile_context>
chip_gen: v7x
topology: tpu7x:2x2x1
jax: 0.10.0
libtpu: 0.0.40
codegen_flags: <defaults>
</compile_context>

<pallas_src>
import functools

import jax
import jax.numpy as jnp
from jax.experimental import pallas as pl
from jax.experimental.pallas import tpu as pltpu


def _roll_lanes(x, shift):
    """Toroidal roll along the flattened-spatial (lane) axis, jnp.roll semantics."""
    n = x.shape[-1]
    s = shift % n
    if s == 0:
        return x
    if n % 128 == 0:
        return pltpu.roll(x, s, axis=x.ndim - 1)     # XLU lane rotation
    return jnp.roll(x, s, axis=x.ndim - 1)           # small/unaligned fallback


def _perception(x, first_col, last_col, W):
    """Fixed-filter perception [ident, sobel_x, sobel_y, laplacian].

    x: (Cp, H*W) flattened row-major, circular (toroidal) boundary conditions.
    Separable: vertical pass via rolls by +-W (exact toroidal), horizontal pass
    via rolls by +-1 with a row-boundary fix-up select.
    """
    up = _roll_lanes(x, W)       # x[i-1, j] (wraps to last row)
    dn = _roll_lanes(x, -W)      # x[i+1, j]
    S = up + 2.0 * x + dn        # vertical [1, 2, 1]
    D = dn - up                  # vertical [-1, 0, 1]

    def left(a):   # a[i, j-1], wrapping inside the row
        return jnp.where(first_col, _roll_lanes(a, -(W - 1)), _roll_lanes(a, 1))

    def right(a):  # a[i, j+1], wrapping inside the row
        return jnp.where(last_col, _roll_lanes(a, W - 1), _roll_lanes(a, -1))

    lS, rS = left(S), right(S)
    sobel_x = rS - lS                           # horizontal [-1, 0, 1] of S
    sobel_y = left(D) + 2.0 * D + right(D)      # horizontal [ 1, 2, 1] of D
    lap = lS + 2.0 * S + rS - 16.0 * x          # [1,2,1]x[1,2,1] - 16*ident
    return jnp.concatenate([x, sobel_x, sobel_y, lap], axis=0)   # (4*Cp, H*W)


def _ca_kernel(x_ref, mask_ref, w1_ref, b1_ref, w2_ref, out_ref, *, W):
    """One grid step = Bt batch images.

    x_ref    : (Bt, Cp, N)     N = H*W, channel-padded input (f32)
    mask_ref : (Bt, 1, N)      stochastic update mask (f32 0/1)
    w1_ref   : (hidden, 4*Cp)  bf16, columns ordered filter-major f*Cp + c
    b1_ref   : (hidden, 1)     f32
    w2_ref   : (Cp, hidden)    bf16 (padded output channels are zero rows)
    out_ref  : (Bt, Cp, N)     f32
    """
    Bt, Cp, N = x_ref.shape

    col = jax.lax.broadcasted_iota(jnp.int32, (Cp, N), 1) % W
    first_col = col == 0
    last_col = col == (W - 1)

    # Perception for every image in the block, lane-concatenated so both 1x1
    # convolutions run as single lane-dense MXU matmuls over all Bt images.
    ps = [
        _perception(x_ref[b], first_col, last_col, W).astype(w1_ref.dtype)
        for b in range(Bt)
    ]
    p = ps[0] if Bt == 1 else jnp.concatenate(ps, axis=1)        # (4Cp, Bt*N)

    h = jnp.dot(w1_ref[...], p, preferred_element_type=jnp.float32)
    h = jnp.maximum(h + b1_ref[...], 0.0)                        # bias bcast over lanes
    delta = jnp.dot(w2_ref[...], h.astype(w2_ref.dtype),
                    preferred_element_type=jnp.float32)          # (Cp, Bt*N)

    for b in range(Bt):
        d = delta[:, b * N:(b + 1) * N]
        out_ref[b] = x_ref[b] + d * mask_ref[b]                  # mask bcast over Cp


def _update_mask(key, B, N, update_rate):
    # floor(U[0,1) + rate) == Bernoulli(rate), same as the torch code.
    return jnp.floor(
        jax.random.uniform(key, (B, 1, N), dtype=jnp.float32) + update_rate)


def ca_forward(x_nchw, w1_torch, b1, w2_torch, mask_key, update_rate=0.5,
               block_batch=None):
    """CA.forward.

    x_nchw  : (B, C, H, W) f32   (PyTorch NCHW convention)
    w1_torch: (hidden, 4*C)      nn.Conv2d(chn*4, hidden_n, 1).weight squeezed
    b1      : (hidden,)          its bias
    w2_torch: (C, hidden)        nn.Conv2d(hidden_n, chn, 1, bias=False).weight squeezed
    mask_key: jax PRNG key for the stochastic update mask
    """
    B, C, H, W = x_nchw.shape
    hidden = w1_torch.shape[0]
    N = H * W
    Cp = ((C + 7) // 8) * 8          # pad channels to a sublane multiple

    # --- glue (layout plumbing only; NCHW is already channel-major) ---------
    x = jnp.pad(x_nchw.astype(jnp.float32).reshape(B, C, N),
                ((0, 0), (0, Cp - C), (0, 0)))                   # (B, Cp, N)
    mask = _update_mask(mask_key, B, N, update_rate)             # (B, 1, N)

    mm_dtype = jnp.bfloat16          # MXU operands; accumulation stays f32
    # Torch perception channel order is c*4 + f; the kernel consumes
    # filter-major f*Cp + c (zero columns for the padded channels).
    w1_k = jnp.transpose(w1_torch.reshape(hidden, C, 4), (0, 2, 1))  # (hidden,4,C)
    w1_k = jnp.pad(w1_k, ((0, 0), (0, 0), (0, Cp - C)))
    w1_k = w1_k.reshape(hidden, 4 * Cp).astype(mm_dtype)
    b1_k = b1.reshape(hidden, 1).astype(jnp.float32)
    w2_k = jnp.pad(w2_torch, ((0, Cp - C), (0, 0))).astype(mm_dtype)  # (Cp, hidden)

    # --- batch blocking: amortize per-grid-step overhead, but keep >= 2 grid
    # steps when B >= 2 (v7x has 2 TensorCores) and a bounded VMEM footprint.
    if block_batch is None:
        per_img = 4 * N * (2 * Cp + 1 + hidden + 4 * Cp)   # rough f32 bytes/image
        bt = max(1, min(B // 2 if B >= 2 else 1, (4 << 20) // max(per_img, 1)))
        while B % bt:
            bt -= 1
        block_batch = bt
    Bt = block_batch
    assert B % Bt == 0

    out = pl.pallas_call(
        functools.partial(_ca_kernel, W=W),
        out_shape=jax.ShapeDtypeStruct((B, Cp, N), jnp.float32),
        grid_spec=pltpu.PrefetchScalarGridSpec(
            num_scalar_prefetch=0,
            grid=(B // Bt,),
            in_specs=[
                pl.BlockSpec((Bt, Cp, N), lambda g: (g, 0, 0)),
                pl.BlockSpec((Bt, 1, N), lambda g: (g, 0, 0)),
                pl.BlockSpec((hidden, 4 * Cp), lambda g: (0, 0)),
                pl.BlockSpec((hidden, 1), lambda g: (0, 0)),
                pl.BlockSpec((Cp, hidden), lambda g: (0, 0)),
            ],
            out_specs=pl.BlockSpec((Bt, Cp, N), lambda g: (g, 0, 0)),
        ),
        compiler_params=pltpu.CompilerParams(
            dimension_semantics=("parallel",)),
    )(x, mask, w1_k, b1_k, w2_k)

    # TODO(synk): for large grids (e.g. 512x512) add a haloed row-tile grid axis
    # and set vmem_limit_bytes so the per-step block plus the (hidden, HW)
    # intermediate stays under 32 MiB (v6e scoped) / 64 MiB (v7x physical) VMEM.
    return out[:, :C, :].reshape(B, C, H, W)


def _ca_reference(x, w1, b1, w2, mask_flat):
    """Pure-JAX f32 replica of the PyTorch module (for verification)."""
    B, C, H, W = x.shape
    ident = jnp.array([[0., 0., 0.], [0., 1., 0.], [0., 0., 0.]])
    sobel_x = jnp.array([[-1., 0., 1.], [-2., 0., 2.], [-1., 0., 1.]])
    lap = jnp.array([[1., 2., 1.], [2., -12., 2.], [1., 2., 1.]])
    filters = jnp.stack([ident, sobel_x, sobel_x.T, lap])        # (4,3,3)

    xp = jnp.pad(x, ((0, 0), (0, 0), (1, 1), (1, 1)), mode="wrap")
    y = jnp.zeros((B, C, 4, H, W), jnp.float32)
    for f in range(4):
        acc = jnp.zeros((B, C, H, W), jnp.float32)
        for dy in range(3):
            for dx in range(3):
                acc = acc + filters[f, dy, dx] * xp[:, :, dy:dy + H, dx:dx + W]
        y = y.at[:, :, f].set(acc)
    y = y.reshape(B, C * 4, H, W)                                # channel order c*4+f
    h = jnp.einsum("oc,bchw->bohw", w1, y) + b1[None, :, None, None]
    h = jnp.maximum(h, 0.0)
    d = jnp.einsum("oc,bchw->bohw", w2, h)
    return x + d * mask_flat.reshape(B, 1, H, W)


if __name__ == "__main__":
    chn, hidden_n = 12, 96          # module defaults
    B, H, W = 2, 16, 16

    key = jax.random.PRNGKey(0)
    kx, k1, kb, k2, km = jax.random.split(key, 5)

    x = jax.random.normal(kx, (B, chn, H, W), dtype=jnp.float32)
    # nn.Conv2d(chn*4, hidden_n, 1): weight (hidden, 4*chn, 1, 1) squeezed, bias (hidden,)
    w1 = 0.1 * jax.random.normal(k1, (hidden_n, 4 * chn), dtype=jnp.float32)
    b1 = 0.1 * jax.random.normal(kb, (hidden_n,), dtype=jnp.float32)
    # nn.Conv2d(hidden_n, chn, 1, bias=False): weight (chn, hidden_n, 1, 1) squeezed.
    # (Reference __init__ zero-inits w2; small nonzero values exercise the full path.)
    w2 = 0.05 * jax.random.normal(k2, (chn, hidden_n), dtype=jnp.float32)

    out = ca_forward(x, w1, b1, w2, km, update_rate=0.5)
    jax.block_until_ready(out)
    assert out.shape == (B, chn, H, W) and out.dtype == jnp.float32

    # Verify against the f32 reference (bf16 MXU operands => loose tolerance).
    mask_flat = _update_mask(km, B, H * W, 0.5)
    ref = _ca_reference(x, w1, b1, w2, mask_flat)
    max_err = float(jnp.max(jnp.abs(out - ref)))
    mean_err = float(jnp.mean(jnp.abs(out - ref)))
    assert max_err < 0.3 and mean_err < 0.05, (max_err, mean_err)
    print("KERNEL_OK")
</pallas_src>

<mosaic_0001>
module attributes {stable_mosaic.version = 11 : i64} {
  func.func @_ca_kernel(%arg0: i32, %arg1: memref<1x16x256xf32, #tpu.memory_space<vmem>>, %arg2: memref<1x1x256xf32, #tpu.memory_space<vmem>>, %arg3: memref<96x64xbf16, #tpu.memory_space<vmem>>, %arg4: memref<96x1xf32, #tpu.memory_space<vmem>>, %arg5: memref<16x96xbf16, #tpu.memory_space<vmem>>, %arg6: memref<1x16x256xf32, #tpu.memory_space<vmem>>) attributes {dimension_semantics = [#tpu.dimension_semantics<parallel>], iteration_bounds = array<i64: 2>, scalar_prefetch = 0 : i64, scratch_operands = 0 : i64, tpu.core_type = #tpu.core_type<tc>, window_params = [{transform_indices = @transform_0, window_bounds = array<i64: 1, 16, 256>}, {transform_indices = @transform_1, window_bounds = array<i64: 1, 1, 256>}, {pipeline_mode = #tpu.pipeline_mode<synchronous>, transform_indices = @transform_2, window_bounds = array<i64: 96, 64>}, {pipeline_mode = #tpu.pipeline_mode<synchronous>, transform_indices = @transform_3, window_bounds = array<i64: 96, 1>}, {pipeline_mode = #tpu.pipeline_mode<synchronous>, transform_indices = @transform_4, window_bounds = array<i64: 16, 96>}, {transform_indices = @transform_5, window_bounds = array<i64: 1, 16, 256>}]} {
    %0 = tpu.iota {dimensions = array<i32: 1>} : vector<16x256xi32>
    %c16_i32 = arith.constant 16 : i32
    %c0_i32 = arith.constant 0 : i32
    %1 = arith.cmpi eq, %c16_i32, %c0_i32 : i32
    %c1_i32 = arith.constant 1 : i32
    %2 = arith.select %1, %c1_i32, %c16_i32 : i32
    %3 = vector.broadcast %2 : i32 to vector<16x256xi32>
    %4 = arith.remsi %0, %3 : vector<16x256xi32>
    %c0_i32_0 = arith.constant 0 : i32
    %5 = vector.broadcast %c0_i32_0 : i32 to vector<16x256xi32>
    %6 = arith.cmpi ne, %4, %5 : vector<16x256xi32>
    %c0_i32_1 = arith.constant 0 : i32
    %7 = vector.broadcast %c0_i32_1 : i32 to vector<16x256xi32>
    %8 = arith.cmpi slt, %4, %7 : vector<16x256xi32>
    %c0_i32_2 = arith.constant 0 : i32
    %9 = arith.cmpi slt, %2, %c0_i32_2 : i32
    %10 = vector.broadcast %9 : i1 to vector<16x256xi1>
    %11 = vector.broadcast %10 : vector<16x256xi1> to vector<16x256xi1>
    %12 = arith.xori %8, %11 : vector<16x256xi1>
    %13 = arith.andi %12, %6 : vector<16x256xi1>
    %14 = vector.broadcast %2 : i32 to vector<16x256xi32>
    %15 = arith.addi %4, %14 : vector<16x256xi32>
    %16 = arith.select %13, %15, %4 : vector<16x256xi1>, vector<16x256xi32>
    %c0_i32_3 = arith.constant 0 : i32
    %17 = vector.broadcast %c0_i32_3 : i32 to vector<16x256xi32>
    %18 = arith.cmpi eq, %16, %17 : vector<16x256xi32>
    %c15_i32 = arith.constant 15 : i32
    %19 = vector.broadcast %c15_i32 : i32 to vector<16x256xi32>
    %20 = arith.cmpi eq, %16, %19 : vector<16x256xi32>
    %c0 = arith.constant 0 : index
    %c0_4 = arith.constant 0 : index
    %c0_5 = arith.constant 0 : index
    %21 = vector.load %arg1[%c0, %c0_4, %c0_5] : memref<1x16x256xf32, #tpu.memory_space<vmem>>, vector<1x16x256xf32>
    %22 = vector.shape_cast %21 : vector<1x16x256xf32> to vector<16x256xf32>
    %c16_i32_6 = arith.constant 16 : i32
    %23 = tpu.dynamic_rotate %22 by %c16_i32_6 dim 1 : vector<16x256xf32>, i32 -> vector<16x256xf32>
    %c240_i32 = arith.constant 240 : i32
    %24 = tpu.dynamic_rotate %22 by %c240_i32 dim 1 : vector<16x256xf32>, i32 -> vector<16x256xf32>
    %cst = arith.constant 2.000000e+00 : f32
    %25 = vector.broadcast %cst : f32 to vector<16x256xf32>
    %26 = arith.mulf %25, %22 : vector<16x256xf32>
    %27 = arith.addf %23, %26 : vector<16x256xf32>
    %28 = arith.addf %27, %24 : vector<16x256xf32>
    %29 = arith.subf %24, %23 : vector<16x256xf32>
    %c241_i32 = arith.constant 241 : i32
    %30 = tpu.dynamic_rotate %28 by %c241_i32 dim 1 : vector<16x256xf32>, i32 -> vector<16x256xf32>
    %c1_i32_7 = arith.constant 1 : i32
    %31 = tpu.dynamic_rotate %28 by %c1_i32_7 dim 1 : vector<16x256xf32>, i32 -> vector<16x256xf32>
    %32 = arith.select %18, %30, %31 : vector<16x256xi1>, vector<16x256xf32>
    %c15_i32_8 = arith.constant 15 : i32
    %33 = tpu.dynamic_rotate %28 by %c15_i32_8 dim 1 : vector<16x256xf32>, i32 -> vector<16x256xf32>
    %c255_i32 = arith.constant 255 : i32
    %34 = tpu.dynamic_rotate %28 by %c255_i32 dim 1 : vector<16x256xf32>, i32 -> vector<16x256xf32>
    %35 = arith.select %20, %33, %34 : vector<16x256xi1>, vector<16x256xf32>
    %36 = arith.subf %35, %32 : vector<16x256xf32>
    %c241_i32_9 = arith.constant 241 : i32
    %37 = tpu.dynamic_rotate %29 by %c241_i32_9 dim 1 : vector<16x256xf32>, i32 -> vector<16x256xf32>
    %c1_i32_10 = arith.constant 1 : i32
    %38 = tpu.dynamic_rotate %29 by %c1_i32_10 dim 1 : vector<16x256xf32>, i32 -> vector<16x256xf32>
    %39 = arith.select %18, %37, %38 : vector<16x256xi1>, vector<16x256xf32>
    %cst_11 = arith.constant 2.000000e+00 : f32
    %40 = vector.broadcast %cst_11 : f32 to vector<16x256xf32>
    %41 = arith.mulf %40, %29 : vector<16x256xf32>
    %42 = arith.addf %39, %41 : vector<16x256xf32>
    %c15_i32_12 = arith.constant 15 : i32
    %43 = tpu.dynamic_rotate %29 by %c15_i32_12 dim 1 : vector<16x256xf32>, i32 -> vector<16x256xf32>
    %c255_i32_13 = arith.constant 255 : i32
    %44 = tpu.dynamic_rotate %29 by %c255_i32_13 dim 1 : vector<16x256xf32>, i32 -> vector<16x256xf32>
    %45 = arith.select %20, %43, %44 : vector<16x256xi1>, vector<16x256xf32>
    %46 = arith.addf %42, %45 : vector<16x256xf32>
    %cst_14 = arith.constant 2.000000e+00 : f32
    %47 = vector.broadcast %cst_14 : f32 to vector<16x256xf32>
    %48 = arith.mulf %47, %28 : vector<16x256xf32>
    %49 = arith.addf %32, %48 : vector<16x256xf32>
    %50 = arith.addf %49, %35 : vector<16x256xf32>
    %cst_15 = arith.constant 1.600000e+01 : f32
    %51 = vector.broadcast %cst_15 : f32 to vector<16x256xf32>
    %52 = arith.mulf %51, %22 : vector<16x256xf32>
    %53 = arith.subf %50, %52 : vector<16x256xf32>
    %54 = tpu.concatenate %22, %36, %46, %53 in 0 : vector<16x256xf32>, vector<16x256xf32>, vector<16x256xf32>, vector<16x256xf32> -> vector<64x256xf32>
    %55 = arith.truncf %54 : vector<64x256xf32> to vector<64x256xbf16>
    %c0_16 = arith.constant 0 : index
    %c0_17 = arith.constant 0 : index
    %56 = vector.load %arg3[%c0_16, %c0_17] : memref<96x64xbf16, #tpu.memory_space<vmem>>, vector<96x64xbf16>
    %cst_18 = arith.constant dense<0.000000e+00> : vector<96x256xf32>
    %57 = tpu.matmul %56, %55, %cst_18 {dimension_numbers = #tpu.dot_dimension_numbers<[1], [0], [0], [1], [0, 0, 1, 1], [], []>} : vector<96x64xbf16>, vector<64x256xbf16>, vector<96x256xf32> -> vector<96x256xf32>
    %c0_19 = arith.constant 0 : index
    %c0_20 = arith.constant 0 : index
    %58 = vector.load %arg4[%c0_19, %c0_20] : memref<96x1xf32, #tpu.memory_space<vmem>>, vector<96x1xf32>
    %59 = vector.broadcast %58 : vector<96x1xf32> to vector<96x256xf32>
    %60 = arith.addf %57, %59 : vector<96x256xf32>
    %cst_21 = arith.constant 0.000000e+00 : f32
    %61 = vector.broadcast %cst_21 : f32 to vector<96x256xf32>
    %62 = arith.maximumf %60, %61 : vector<96x256xf32>
    %c0_22 = arith.constant 0 : index
    %c0_23 = arith.constant 0 : index
    %63 = vector.load %arg5[%c0_22, %c0_23] : memref<16x96xbf16, #tpu.memory_space<vmem>>, vector<16x96xbf16>
    %64 = arith.truncf %62 : vector<96x256xf32> to vector<96x256xbf16>
    %cst_24 = arith.constant dense<0.000000e+00> : vector<16x256xf32>
    %65 = tpu.matmul %63, %64, %cst_24 {dimension_numbers = #tpu.dot_dimension_numbers<[1], [0], [0], [1], [0, 0, 1, 1], [], []>} : vector<16x96xbf16>, vector<96x256xbf16>, vector<16x256xf32> -> vector<16x256xf32>
    %c0_25 = arith.constant 0 : index
    %c0_26 = arith.constant 0 : index
    %c0_27 = arith.constant 0 : index
    %66 = vector.load %arg1[%c0_25, %c0_26, %c0_27] : memref<1x16x256xf32, #tpu.memory_space<vmem>>, vector<1x16x256xf32>
    %67 = vector.shape_cast %66 : vector<1x16x256xf32> to vector<16x256xf32>
    %c0_28 = arith.constant 0 : index
    %c0_29 = arith.constant 0 : index
    %c0_30 = arith.constant 0 : index
    %68 = vector.load %arg2[%c0_28, %c0_29, %c0_30] : memref<1x1x256xf32, #tpu.memory_space<vmem>>, vector<1x1x256xf32>
    %69 = vector.shape_cast %68 : vector<1x1x256xf32> to vector<1x256xf32>
    %70 = vector.broadcast %69 : vector<1x256xf32> to vector<16x256xf32>
    %71 = arith.mulf %65, %70 : vector<16x256xf32>
    %72 = arith.addf %67, %71 : vector<16x256xf32>
    %c0_31 = arith.constant 0 : index
    %c0_32 = arith.constant 0 : index
    %c0_33 = arith.constant 0 : index
    %73 = vector.load %arg6[%c0_31, %c0_32, %c0_33] : memref<1x16x256xf32, #tpu.memory_space<vmem>>, vector<1x16x256xf32>
    %74 = vector.shape_cast %73 : vector<1x16x256xf32> to vector<16x256xf32>
    %75 = vector.shape_cast %72 : vector<16x256xf32> to vector<1x16x256xf32>
    tpu.vector_store %arg6[%c0_31, %c0_32, %c0_33], %75 {strides = array<i32>} : memref<1x16x256xf32, #tpu.memory_space<vmem>>, vector<1x16x256xf32>,
    return
  }
  func.func @transform_0(%arg0: i32) -> (i32, i32, i32) {
    %c0_i32 = arith.constant 0 : i32
    %c0_i32_0 = arith.constant 0 : i32
    %c0_i32_1 = arith.constant 0 : i32
    return %arg0, %c0_i32, %c0_i32_0 : i32, i32, i32
  }
  func.func @transform_1(%arg0: i32) -> (i32, i32, i32) {
    %c0_i32 = arith.constant 0 : i32
    %c0_i32_0 = arith.constant 0 : i32
    %c0_i32_1 = arith.constant 0 : i32
    return %arg0, %c0_i32, %c0_i32_0 : i32, i32, i32
  }
  func.func @transform_2(%arg0: i32) -> (i32, i32) {
    %c0_i32 = arith.constant 0 : i32
    %c0_i32_0 = arith.constant 0 : i32
    %c0_i32_1 = arith.constant 0 : i32
    return %c0_i32, %c0_i32_0 : i32, i32
  }
  func.func @transform_3(%arg0: i32) -> (i32, i32) {
    %c0_i32 = arith.constant 0 : i32
    %c0_i32_0 = arith.constant 0 : i32
    %c0_i32_1 = arith.constant 0 : i32
    return %c0_i32, %c0_i32_0 : i32, i32
  }
  func.func @transform_4(%arg0: i32) -> (i32, i32) {
    %c0_i32 = arith.constant 0 : i32
    %c0_i32_0 = arith.constant 0 : i32
    %c0_i32_1 = arith.constant 0 : i32
    return %c0_i32, %c0_i32_0 : i32, i32
  }
  func.func @transform_5(%arg0: i32) -> (i32, i32, i32) {
    %c0_i32 = arith.constant 0 : i32
    %c0_i32_0 = arith.constant 0 : i32
    %c0_i32_1 = arith.constant 0 : i32
    return %arg0, %c0_i32, %c0_i32_0 : i32, i32, i32
  }
}

</mosaic_0001>

<bundles_post_ra>
// kernel: tpu_custom_call.1
= control target key start
LH: loop header
LB: loop body
LE: loop exit
PB: predicated region body
PF: predicated region fallthrough
CT: control target
= control target key end

     0   :  { %10 = vsyncpa [#allocation3], 0  ;;  %s1573_s0 = inlined_call_operand.vmem [shape: f32[2,16,256], index: 0, kind: input, shape index: {}]   ;;  %s1574_s1 = inlined_call_operand.vmem [shape: f32[2,1,256], index: 1, kind: input, shape index: {}]   ;;  %s1575_s2 = inlined_call_operand.vmem [shape: bf16[96,64], index: 2, kind: input, shape index: {}]   ;;  %s1576_s3 = inlined_call_operand.vmem [shape: f32[96,1], index: 3, kind: input, shape index: {}]   ;;  %s1577_s4 = inlined_call_operand.vmem [shape: bf16[16,96], index: 4, kind: input, shape index: {}]   ;;  %s1578_s5 = inlined_call_operand.hbm [shape: f32[2,16,256], index: 5, kind: output, shape index: {}]  }
   0x1   :  { %12 = vsyncpa [#allocation3 + $0x1], 0  ;;  %s1094_s18 = smov 0   ;;  %s1096_s19 = smov 0  }
   0x2   :  { %s1098_s20 = smov 0   ;;  %s1100_s21 = smov 0  }
   0x3 LB: > { %s1115_s22 = sadd.s32 4294967295, %s1053_s21   ;;  %s906_s23 = sadd.s32 4294967294, %s1053_s21   ;;  %s1053_s21 = sphi %s1100_s21, %s1592_s21   ;;  %s1049_s20 = sphi %s1098_s20, %s1591_s20   ;;  %s1045_s19 = sphi %s1096_s19, %s1590_s19   ;;  %s1041_s18 = sphi %s1094_s18, %s1589_s18  }
   0x4   : > { %s1119_s24 = sadd.s32 1, %s1053_s21   ;;  %s140_s25 = sadd.s32 1, %s1049_s20 }
   0x5   : > { %s137_s26 = ssub.s32 %s1053_s21, %s1119_s24  ;;  %p150_p0 = scmp.ne.s32.totalorder %s1049_s20, %s1045_s19 }
   0x6   : > { %p138_p1 = scmp.eq.s32.totalorder %s137_s26, 0  ;;  %p151_p2 = scmp.eq.s32.totalorder %s1115_s22, 1 }
   0x7   : > { %p156_p3 = scmp.ne.s32.totalorder %s1045_s19, %s1041_s18  ;;  %p157_p4 = scmp.eq.s32.totalorder %s906_s23, 1 }
   0x8   : > { %s1130_s27 = scalar_select %p138_p1, %s1049_s20, %s140_s25  }
   0x9   : > { %p1132_p5 = por %p151_p2, %p150_p0  ;;  %p1136_p6 = por %p157_p4, %p156_p3 }
   0xa   : > { %p909_p7 = scmp.ge.s32.totalorder %s1053_s21, 1  ;;  %p199_p8 = scmp.lt.s32.totalorder %s1053_s21, 3 }
   0xc   : > { %p200_p9 = pnand %p909_p7, %p199_p8 }
   0xd   : > { %p231_p10 = scmp.lt.s32.totalorder (!%p200_p9), %s1115_s22, 1  ;;  %s1055_s10 = smov (!%p200_p9), 16   ;;  %v241_v6 = vlaneseq (!%p200_p9)  ;;  %v1061_v40 = vmov (!%p200_p9), 0   ;;  %v490_v41 = vld [vmem:[%s1576_s3] sm:$0xff] (!%p200_p9)  ;;  %v491_v42 = vld [vmem:[%s1576_s3 + $0x8] sm:$0xff] (!%p200_p9)  ;;  %v492_v43 = vld [vmem:[%s1576_s3 + $0x10] sm:$0xff] (!%p200_p9) }
   0xe   : > { %203 = sbr.rel (%p200_p9) target bundleno = 847 (0x34f), region = 40  ;;  %s1056_s11 = smov (!%p200_p9), 112   ;;  %643 = vmatprep.mubr.bf16.mxu0 (!%p200_p9), %v1061_v40  ;;  %982 = vset.pattern.permute.xlu0 (!%p200_p9), %v1061_v40  ;;  %v493_v44 = vld [vmem:[%s1576_s3 + $0x18] sm:$0xff] (!%p200_p9)  ;;  %v494_v45 = vld [vmem:[%s1576_s3 + $0x20] sm:$0xff] (!%p200_p9)  ;;  %v495_v46 = vld [vmem:[%s1576_s3 + $0x28] sm:$0xff] (!%p200_p9)  ;;  %vm592_vm10 = vcmask (!%p200_p9), 523264  }
   0xf   : > { %v1171_v9 = vand.u32 (!%p200_p9), 127, %v241_v6  ;;  %s1057_s12 = smov (!%p200_p9), 113   ;;  %s1058_s13 = smov (!%p200_p9), 1   ;;  %983 = vset.pattern.permute.xlu1 (!%p200_p9), %v1061_v40  ;;  %783 = vmatprep.mubr.bf16.mxu1 (!%p200_p9), %v1061_v40  ;;  %v496_v49 = vld [vmem:[%s1576_s3 + $0x30] sm:$0xff] (!%p200_p9)  ;;  %v497_v50 = vld [vmem:[%s1576_s3 + $0x38] sm:$0xff] (!%p200_p9)  ;;  %v498_v53 = vld [vmem:[%s1576_s3 + $0x40] sm:$0xff] (!%p200_p9) }
  0x10   : > { %s1059_s14 = smov (!%p200_p9), 15   ;;  %s1060_s15 = smov (!%p200_p9), 127   ;;  %v499_v54 = vld [vmem:[%s1576_s3 + $0x48] sm:$0xff] (!%p200_p9)  ;;  %v500_v57 = vld [vmem:[%s1576_s3 + $0x50] sm:$0xff] (!%p200_p9)  ;;  %v501_v58 = vld [vmem:[%s1576_s3 + $0x58] sm:$0xff] (!%p200_p9)  ;;  %vm747_vm11 = vcmask (!%p200_p9), 785408  }
  0x11   : > { %vm297_vm0 = vcmp.lt.s32.totalorder (!%p200_p9), %v1171_v9, 112  ;;  %vm284_vm1 = vcmp.lt.s32.totalorder (!%p200_p9), %v1171_v9, 16  ;;  %vm326_vm2 = vcmp.lt.s32.totalorder (!%p200_p9), %v1171_v9, 113  ;;  %vm339_vm3 = vcmp.lt.s32.totalorder (!%p200_p9), %v1171_v9, 1  ;;  %s228_s16 = sand.u32 (!%p200_p9), 1, %s1045_s19  }
  0x12   : > { %vm356_vm6 = vcmp.lt.s32.totalorder (!%p200_p9), %v1171_v9, 15  ;;  %vm369_vm7 = vcmp.lt.s32.totalorder (!%p200_p9), %v1171_v9, 127  ;;  %s910_s17 = sshll.u32 (!%p200_p9), %s228_s16, 5 }
  0x13   : > { %s230_s23 = scalar_lea.vmem (!%p200_p9), [#allocation2], %s910_s17 }
  0x14   : > { %s832_s25 = sshll.u32 (!%p200_p9), %s230_s23, 4  ;;  %s1522_s25 = int_to_ptr.vmem [resolvable:$true] %s832_s25 }
  0x15   : > { %s1144_s30 = scalar_select %p231_p10, %s1115_s22, 1 }
  0x16   : > { %s991_s8 = scalar_lea.vmem %s1522_s25, 512 }
  0x17   : > { %s933_s6 = sshll.u32 %s1144_s30, 5  ;;  %p992_p11 = scmp.ne.s32.totalorder %s1522_s25, %s991_s8 }
  0x18   : > { %s235_s9 = scalar_lea.vmem %s1573_s0, %s933_s6 }
  0x19   : > { %v1150_v0 = vld [vmem:[%s235_s9 + $0x8] sm:$0xff]  ;;  %v1152_v1 = vld [vmem:[%s235_s9] sm:$0xff]  ;;  %v1158_v2 = vld [vmem:[%s235_s9 + $0x18] sm:$0xff]  ;;  %p993_p12 = pnand %p992_p11, %p1132_p5 }
  0x1a   : > { %280 = vrot.lane.b32.xlu1 %v1150_v0, %s1055_s10  ;;  %276 = vrot.lane.b32.xlu0 %v1152_v1, %s1055_s10  ;;  %v1160_v3 = vld [vmem:[%s235_s9 + $0x10] sm:$0xff]  ;;  %v302_v27 = vmul.f32 2.0, %v1152_v1  ;;  %v305_v28 = vmul.f32 2.0, %v1158_v2  ;;  %v303_v30 = vmul.f32 2.0, %v1150_v0  ;;  %v471_v38 = vpack.c.bf16 %v1158_v2, %v1150_v0  ;;  %s1062_s9 = smov [#allocation2]  }
  0x1b   : > { %v304_v26 = vmul.f32 2.0, %v1160_v3  ;;  %v470_v39 = vpack.c.bf16 %v1160_v3, %v1152_v1  ;;  %p994_p13 = pneg %p993_p12 }
  0x1c   : > { %611 = vmatprep.subr.bf16.mxu0 %v471_v38 }
  0x1d   : > { %612 = vmatpush1.bf16.msra.mxu0 %v470_v39 }
  0x1e   : > { %282 = vrot.lane.b32.xlu1 %v1158_v2, %s1055_s10  ;;  %278 = vrot.lane.b32.xlu0 %v1160_v3, %s1055_s10 }
  0x22   : > { %291 = vrot.lane.b32.xlu1 %v1160_v3, %s1056_s11  ;;  %289 = vrot.lane.b32.xlu0 %v1152_v1, %s1056_s11 }
  0x26   : > { %295 = vrot.lane.b32.xlu1 %v1158_v2, %s1056_s11  ;;  %293 = vrot.lane.b32.xlu0 %v1150_v0, %s1056_s11  ;;  %s995_s11 = sshll.u32 %s1062_s9, 4  ;;  %s996_s11 = int_to_ptr.vmem [resolvable:$false] %s995_s11 }
  0x27   : > { %p998_p0 = scmp.lt.s32.totalorder %s1522_s25, %s996_s11 }
  0x8c   : > { %v281_v4 = vpop.permute.xlu1 %280  ;;  %v277_v5 = vpop.permute.xlu0 %276 }
  0x8d   : > { %v287_v17 = vsel %vm284_vm1, %v281_v4, %v277_v5  ;;  %v285_v23 = vsel %vm284_vm1, %v277_v5, %v281_v4 }
  0x8e   : > { %v306_v31 = vadd.f32 %v302_v27, %v287_v17  ;;  %v307_v35 = vadd.f32 %v303_v30, %v285_v23 }
  0x90   : > { %v283_v7 = vpop.permute.xlu1 %282  ;;  %v279_v8 = vpop.permute.xlu0 %278 }
  0x91   : > { %v288_v14 = vsel %vm284_vm1, %v283_v7, %v279_v8  ;;  %v286_v22 = vsel %vm284_vm1, %v279_v8, %v283_v7 }
  0x92   : > { %v308_v29 = vadd.f32 %v304_v26, %v288_v14  ;;  %v309_v34 = vadd.f32 %v305_v28, %v286_v22 }
  0x94   : > { %v292_v10 = vpop.permute.xlu1 %291  ;;  %v290_v11 = vpop.permute.xlu0 %289 }
  0x98   : > { %v296_v12 = vpop.permute.xlu1 %295  ;;  %v294_v13 = vpop.permute.xlu0 %293 }
  0x99   : > { %v299_v15 = vsel %vm297_vm0, %v292_v10, %v296_v12  ;;  %v298_v16 = vsel %vm297_vm0, %v290_v11, %v294_v13  ;;  %v301_v19 = vsel %vm297_vm0, %v296_v12, %v292_v10  ;;  %v300_v21 = vsel %vm297_vm0, %v294_v13, %v290_v11 }
  0x9a   : > { %v1175_v18 = vsub.f32 %v299_v15, %v288_v14  ;;  %v1177_v20 = vsub.f32 %v298_v16, %v287_v17  ;;  %v1183_v24 = vsub.f32 %v301_v19, %v286_v22  ;;  %v1185_v25 = vsub.f32 %v300_v21, %v285_v23 }
  0x9b   : > { %v1215_v32 = vadd.f32 %v308_v29, %v299_v15  ;;  %v1217_v33 = vadd.f32 %v306_v31, %v298_v16  ;;  %v1223_v36 = vadd.f32 %v309_v34, %v301_v19  ;;  %v1225_v37 = vadd.f32 %v307_v35, %v300_v21 }
  0x9c   : > { %384 = vrot.lane.b32.xlu1 %v1175_v18, %s1057_s12  ;;  %382 = vrot.lane.b32.xlu0 %v1177_v20, %s1057_s12  ;;  %v243_v14 = vadd.s32 128, %v1171_v9  ;;  %v248_v16 = vand.u32 15, %v1171_v9  ;;  %v412_v23 = vmul.f32 2.0, %v1175_v18  ;;  %v413_v26 = vmul.f32 2.0, %v1183_v24 }
  0x9d   : > { %v411_v27 = vmul.f32 2.0, %v1185_v25  ;;  %v410_v30 = vmul.f32 2.0, %v1177_v20  ;;  %v452_v31 = vmul.f32 2.0, %v1215_v32  ;;  %v453_v34 = vmul.f32 2.0, %v1223_v36 }
  0x9e   : > { %v255_v19 = vand.u32 15, %v243_v14  ;;  %vm1323_vm4 = vcmp.eq.s32.totalorder %v248_v16, 0  ;;  %vm1343_vm8 = vcmp.eq.s32.totalorder %v248_v16, 15 }
  0xa0   : > { %388 = vrot.lane.b32.xlu1 %v1183_v24, %s1057_s12  ;;  %386 = vrot.lane.b32.xlu0 %v1185_v25, %s1057_s12  ;;  %vm1330_vm5 = vcmp.eq.s32.totalorder %v255_v19, 0  ;;  %vm1347_vm9 = vcmp.eq.s32.totalorder %v255_v19, 15 }
  0xa4   : > { %396 = vrot.lane.b32.xlu1 %v1175_v18, %s1058_s13  ;;  %394 = vrot.lane.b32.xlu0 %v1177_v20, %s1058_s13 }
  0xa8   : > { %400 = vrot.lane.b32.xlu1 %v1183_v24, %s1058_s13  ;;  %398 = vrot.lane.b32.xlu0 %v1185_v25, %s1058_s13 }
  0xac   : > { %420 = vrot.lane.b32.xlu1 %v1175_v18, %s1059_s14  ;;  %418 = vrot.lane.b32.xlu0 %v1177_v20, %s1059_s14 }
  0xb0   : > { %424 = vrot.lane.b32.xlu1 %v1183_v24, %s1059_s14  ;;  %422 = vrot.lane.b32.xlu0 %v1185_v25, %s1059_s14 }
  0xb4   : > { %432 = vrot.lane.b32.xlu1 %v1175_v18, %s1060_s15  ;;  %430 = vrot.lane.b32.xlu0 %v1177_v20, %s1060_s15  ;;  %v451_v18 = vmul.f32 2.0, %v1225_v37 }
  0xb8   : > { %320 = vrot.lane.b32.xlu1 %v1215_v32, %s1057_s12  ;;  %318 = vrot.lane.b32.xlu0 %v1217_v33, %s1057_s12 }
  0xbc   : > { %324 = vrot.lane.b32.xlu1 %v1223_v36, %s1057_s12  ;;  %322 = vrot.lane.b32.xlu0 %v1225_v37, %s1057_s12  ;;  %s913_s12 = sshll.u32 %s1144_s30, 1  ;;  %s934_s30 = sshll.u32 %s1115_s22, 9 }
  0xbd   : > { %s1529_s7 = scalar_lea.hbm %s1578_s5, %s934_s30  ;;  %s1531_s22 = scalar_lea.sflag [#allocation3], %s228_s16 }
  0xc0   : > { %333 = vrot.lane.b32.xlu1 %v1215_v32, %s1058_s13  ;;  %331 = vrot.lane.b32.xlu0 %v1217_v33, %s1058_s13 }
  0xc4   : > { %337 = vrot.lane.b32.xlu1 %v1223_v36, %s1058_s13  ;;  %335 = vrot.lane.b32.xlu0 %v1225_v37, %s1058_s13 }
  0xc8   : > { %350 = vrot.lane.b32.xlu1 %v1215_v32, %s1059_s14  ;;  %348 = vrot.lane.b32.xlu0 %v1217_v33, %s1059_s14 }
  0xcc   : > { %354 = vrot.lane.b32.xlu1 %v1223_v36, %s1059_s14  ;;  %352 = vrot.lane.b32.xlu0 %v1225_v37, %s1059_s14 }
  0xd0   : > { %363 = vrot.lane.b32.xlu1 %v1215_v32, %s1060_s15  ;;  %361 = vrot.lane.b32.xlu0 %v1217_v33, %s1060_s15  ;;  %v1352_v32 = vmul.f32 16.0, %v1150_v0 }
  0xd4   : > { %367 = vrot.lane.b32.xlu1 %v1223_v36, %s1060_s15  ;;  %365 = vrot.lane.b32.xlu0 %v1225_v37, %s1060_s15  ;;  %v1355_v36 = vmul.f32 16.0, %v1158_v2  ;;  %v1358_v37 = vmul.f32 16.0, %v1152_v1 }
  0xd8   : > { %436 = vrot.lane.b32.xlu1 %v1183_v24, %s1060_s15  ;;  %434 = vrot.lane.b32.xlu0 %v1185_v25, %s1060_s15  ;;  %v450_v24 = vmul.f32 2.0, %v1217_v33  ;;  %v1361_v33 = vmul.f32 16.0, %v1160_v3  ;;  %s239_s15 = scalar_lea.vmem %s1574_s1, %s913_s12  ;;  %s997_s12 = scalar_lea.vmem %s996_s11, 1024 }
  0xd9   : > { %p999_p1 = scmp.lt.s32.totalorder %s997_s12, %s991_s8 }
  0xdb   : > { %p1000_p2 = por %p999_p1, %p998_p0 }
  0xdc   : > { %504 = vperm.xlu0 %982, %v490_v41   ;;  %509 = vperm.xlu1 %983, %v491_v42  }
  0xdd   : > { %p1001_p3 = pnand %p1000_p2, %p994_p13 }
  0xe0   : > { %514 = vperm.xlu1 %983, %v492_v43   ;;  %519 = vperm.xlu0 %982, %v493_v44  }
  0xe4   : > { %524 = vperm.xlu1 %983, %v494_v45   ;;  %529 = vperm.xlu0 %982, %v495_v46  }
  0xe8   : > { %534 = vperm.xlu1 %983, %v496_v49   ;;  %539 = vperm.xlu0 %982, %v497_v50  }
  0xec   : > { %544 = vperm.xlu1 %983, %v498_v53   ;;  %549 = vperm.xlu0 %982, %v499_v54  }
  0xf0   : > { %554 = vperm.xlu1 %983, %v500_v57   ;;  %559 = vperm.xlu0 %982, %v501_v58  }
 0x10e   : > { %v1285_v47 = vpop.permute.xlu1 %384  ;;  %v1287_v48 = vpop.permute.xlu0 %382 }
 0x112   : > { %v389_v51 = vpop.permute.xlu1 %388  ;;  %v387_v52 = vpop.permute.xlu0 %386 }
 0x113   : > { %v391_v44 = vsel %vm326_vm2, %v1285_v47, %v389_v51  ;;  %v393_v45 = vsel %vm326_vm2, %v389_v51, %v1285_v47  ;;  %v390_v46 = vsel %vm326_vm2, %v1287_v48, %v387_v52  ;;  %v392_v49 = vsel %vm326_vm2, %v387_v52, %v1287_v48 }
 0x116   : > { %v397_v55 = vpop.permute.xlu1 %396  ;;  %v395_v56 = vpop.permute.xlu0 %394 }
 0x11a   : > { %v401_v59 = vpop.permute.xlu1 %400  ;;  %v399_v60 = vpop.permute.xlu0 %398 }
 0x11b   : > { %v403_v38 = vsel %vm339_vm3, %v397_v55, %v401_v59  ;;  %v405_v39 = vsel %vm339_vm3, %v401_v59, %v397_v55  ;;  %v402_v41 = vsel %vm339_vm3, %v395_v56, %v399_v60  ;;  %v404_v42 = vsel %vm339_vm3, %v399_v60, %v395_v56 }
 0x11c   : > { %v408_v51 = vsel %vm1323_vm4, %v391_v44, %v405_v39  ;;  %v409_v56 = vsel %vm1330_vm5, %v393_v45, %v403_v38  ;;  %v406_v48 = vsel %vm1323_vm4, %v390_v46, %v404_v42  ;;  %v407_v52 = vsel %vm1330_vm5, %v392_v49, %v402_v41 }
 0x11d   : > { %v417_v19 = vadd.f32 %v413_v26, %v409_v56  ;;  %v415_v38 = vadd.f32 %v411_v27, %v407_v52 }
 0x11e   : > { %v1307_v61 = vpop.permute.xlu1 %420  ;;  %v1309_v62 = vpop.permute.xlu0 %418 }
 0x122   : > { %v1311_v63 = vpop.permute.xlu1 %424  ;;  %v1313_v4 = vpop.permute.xlu0 %422 }
 0x123   : > { %v426_v22 = vsel %vm356_vm6, %v1309_v62, %v1313_v4 }
 0x126   : > { %v1315_v5 = vpop.permute.xlu1 %432  ;;  %v1317_v7 = vpop.permute.xlu0 %430 }
 0x12a   : > { %v321_v8 = vpop.permute.xlu1 %320  ;;  %v319_v10 = vpop.permute.xlu0 %318 }
 0x12e   : > { %v325_v11 = vpop.permute.xlu1 %324  ;;  %v323_v12 = vpop.permute.xlu0 %322 }
 0x12f   : > { %v328_v57 = vsel %vm326_vm2, %v321_v8, %v325_v11  ;;  %v330_v58 = vsel %vm326_vm2, %v325_v11, %v321_v8  ;;  %v327_v59 = vsel %vm326_vm2, %v319_v10, %v323_v12  ;;  %v329_v60 = vsel %vm326_vm2, %v323_v12, %v319_v10 }
 0x130   : > { %v416_v11 = vadd.f32 %v412_v23, %v408_v51  ;;  %v427_v10 = vsel %vm356_vm6, %v1307_v61, %v1311_v63  ;;  %v429_v12 = vsel %vm356_vm6, %v1311_v63, %v1307_v61  ;;  %v428_v23 = vsel %vm356_vm6, %v1313_v4, %v1309_v62 }
 0x132   : > { %v334_v13 = vpop.permute.xlu1 %333  ;;  %v332_v15 = vpop.permute.xlu0 %331 }
 0x136   : > { %v338_v17 = vpop.permute.xlu1 %337  ;;  %v336_v21 = vpop.permute.xlu0 %335 }
 0x137   : > { %v341_v53 = vsel %vm339_vm3, %v334_v13, %v338_v17  ;;  %v343_v54 = vsel %vm339_vm3, %v338_v17, %v334_v13  ;;  %v340_v55 = vsel %vm339_vm3, %v332_v15, %v336_v21  ;;  %v342_v47 = vsel %vm339_vm3, %v336_v21, %v332_v15 }
 0x138   : > { %v346_v14 = vsel %vm1323_vm4, %v328_v57, %v343_v54  ;;  %v347_v15 = vsel %vm1330_vm5, %v330_v58, %v341_v53  ;;  %v344_v16 = vsel %vm1323_vm4, %v327_v59, %v342_v47  ;;  %v345_v17 = vsel %vm1330_vm5, %v329_v60, %v340_v55 }
 0x139   : > { %v414_v21 = vadd.f32 %v410_v30, %v406_v48  ;;  %v456_v26 = vadd.f32 %v452_v31, %v346_v14  ;;  %v457_v27 = vadd.f32 %v453_v34, %v347_v15  ;;  %v454_v29 = vadd.f32 %v450_v24, %v344_v16 }
 0x13a   : > { %v351_v28 = vpop.permute.xlu1 %350  ;;  %v1337_v35 = vpop.permute.xlu0 %348  ;;  %v455_v30 = vadd.f32 %v451_v18, %v345_v17 }
 0x13e   : > { %v355_v43 = vpop.permute.xlu1 %354  ;;  %v353_v50 = vpop.permute.xlu0 %352 }
 0x13f   : > { %v358_v41 = vsel %vm356_vm6, %v351_v28, %v355_v43  ;;  %v360_v61 = vsel %vm356_vm6, %v355_v43, %v351_v28  ;;  %v357_v28 = vsel %vm356_vm6, %v1337_v35, %v353_v50  ;;  %v359_v18 = vsel %vm356_vm6, %v353_v50, %v1337_v35 }
 0x142   : > { %v364_v13 = vpop.permute.xlu1 %363  ;;  %v362_v8 = vpop.permute.xlu0 %361 }
 0x146   : > { %v368_v39 = vpop.permute.xlu1 %367  ;;  %v366_v44 = vpop.permute.xlu0 %365 }
 0x147   : > { %v371_v63 = vsel %vm369_vm7, %v364_v13, %v368_v39  ;;  %v373_v42 = vsel %vm369_vm7, %v368_v39, %v364_v13  ;;  %v370_v31 = vsel %vm369_vm7, %v362_v8, %v366_v44  ;;  %v372_v34 = vsel %vm369_vm7, %v366_v44, %v362_v8 }
 0x148   : > { %v376_v62 = vsel %vm1343_vm8, %v360_v61, %v371_v63  ;;  %v377_v4 = vsel %vm1347_vm9, %v358_v41, %v373_v42  ;;  %v374_v49 = vsel %vm1343_vm8, %v359_v18, %v370_v31  ;;  %v375_v53 = vsel %vm1347_vm9, %v357_v28, %v372_v34 }
 0x149   : > { %v380_v24 = vsub.f32 %v376_v62, %v346_v14  ;;  %v381_v43 = vsub.f32 %v377_v4, %v347_v15  ;;  %v460_v45 = vadd.f32 %v456_v26, %v376_v62  ;;  %v461_v46 = vadd.f32 %v457_v27, %v377_v4 }
 0x14a   : > { %v437_v54 = vpop.permute.xlu1 %436  ;;  %v378_v55 = vsub.f32 %v374_v49, %v344_v16  ;;  %v379_v47 = vsub.f32 %v375_v53, %v345_v17  ;;  %v458_v51 = vadd.f32 %v454_v29, %v374_v49  ;;  %v459_v56 = vadd.f32 %v455_v30, %v375_v53  ;;  %v435_v48 = vpop.permute.xlu0 %434 }
 0x14b   : > { %v439_v35 = vsel %vm369_vm7, %v1315_v5, %v437_v54  ;;  %v441_v50 = vsel %vm369_vm7, %v437_v54, %v1315_v5  ;;  %v438_v52 = vsel %vm369_vm7, %v1317_v7, %v435_v48  ;;  %v440_v57 = vsel %vm369_vm7, %v435_v48, %v1317_v7 }
 0x14c   : > { %v444_v58 = vsel %vm1343_vm8, %v429_v12, %v439_v35  ;;  %v445_v59 = vsel %vm1347_vm9, %v427_v10, %v441_v50  ;;  %v442_v60 = vsel %vm1343_vm8, %v428_v23, %v438_v52  ;;  %v443_v5 = vsel %vm1347_vm9, %v426_v22, %v440_v57 }
 0x14d   : > { %v448_v13 = vadd.f32 %v444_v58, %v416_v11  ;;  %v449_v14 = vadd.f32 %v445_v59, %v417_v19  ;;  %v446_v15 = vadd.f32 %v442_v60, %v414_v21  ;;  %v447_v16 = vadd.f32 %v443_v5, %v415_v38  ;;  %v984_v11 = vld [vmem:[%s1575_s2] sm:$0xff]   ;;  %v989_v19 = vld [vmem:[%s1575_s2 + $0x28] sm:$0xff]  }
 0x14e   : > { %v473_v17 = vpack.c.bf16 %v381_v43, %v379_v47  ;;  %v472_v8 = vpack.c.bf16 %v380_v24, %v378_v55  ;;  %v467_v9 = vsub.f32 %v459_v56, %v1352_v32  ;;  %v469_v7 = vsub.f32 %v461_v46, %v1355_v36  ;;  %v985_v32 = vld [vmem:[%s1575_s2 + $0x8] sm:$0xff]   ;;  %v986_v36 = vld [vmem:[%s1575_s2 + $0x10] sm:$0xff]  }
 0x14f   : > { %v475_v12 = vpack.c.bf16 %v449_v14, %v447_v16  ;;  %v474_v26 = vpack.c.bf16 %v448_v13, %v446_v15  ;;  %v466_v10 = vsub.f32 %v458_v51, %v1358_v37  ;;  %v468_v25 = vsub.f32 %v460_v45, %v1361_v33  ;;  %v987_v37 = vld [vmem:[%s1575_s2 + $0x18] sm:$0xff]   ;;  %v988_v33 = vld [vmem:[%s1575_s2 + $0x20] sm:$0xff]  }
 0x150   : > { %613 = vmatprep.subr.bf16.mxu0 %v473_v17  ;;  %v477_v23 = vpack.c.bf16 %v469_v7, %v467_v9 }
 0x151   : > { %614 = vmatpush1.bf16.msra.mxu0 %v472_v8  ;;  %v476_v20 = vpack.c.bf16 %v468_v25, %v466_v10 }
 0x152   : > { %615 = vmatprep.subr.bf16.mxu0 %v475_v12 }
 0x155   : > { %616 = vmatpush1.bf16.msra.mxu0 %v474_v26 }
 0x156   : > { %617 = vmatprep.subr.bf16.mxu0 %v477_v23 }
 0x159   : > { %618 = vmatpush1.bf16.msra.mxu0 %v476_v20 }
 0x15b   : > { %v505_v21 = vpop.permute.xlu0 %504  ;;  %v510_v22 = vpop.permute.xlu1 %509 }
 0x15c   : > { %920 = vmatmul.mubr.msk.bf16.vlgmr.msra.gmra.mrb[0].mxu0 %vm592_vm10, %v984_v11 }
 0x15d   : > { %653 = vmatprep.mubr.bf16.mxu0 %v1061_v40 }
 0x15f   : > { %v515_v4 = vpop.permute.xlu1 %514  ;;  %v520_v43 = vpop.permute.xlu0 %519 }
 0x163   : > { %v525_v35 = vpop.permute.xlu1 %524  ;;  %v530_v59 = vpop.permute.xlu0 %529 }
 0x164   : > { %921 = vmatmul.mubr.msk.bf16.gmra.mrb[4].mxu0 %vm592_vm10, %v985_v32 }
 0x165   : > { %663 = vmatprep.mubr.bf16.mxu0 %v1061_v40 }
 0x167   : > { %v535_v12 = vpop.permute.xlu1 %534  ;;  %v540_v20 = vpop.permute.xlu0 %539 }
 0x16c   : > { %922 = vmatmul.mubr.msk.bf16.gmra.mrb[8].mxu0 %vm592_vm10, %v986_v36 }
 0x16d   : > { %673 = vmatprep.mubr.bf16.mxu0 %v1061_v40 }
 0x174   : > { %923 = vmatmul.mubr.msk.bf16.gmra.mrb[12].mxu0 %vm592_vm10, %v987_v37 }
 0x175   : > { %683 = vmatprep.mubr.bf16.mxu0 %v1061_v40 }
 0x17c   : > { %924 = vmatmul.mubr.msk.bf16.gmra.mrb[16].mxu0 %vm592_vm10, %v988_v33 }
 0x17d   : > { %693 = vmatprep.mubr.bf16.mxu0 %v1061_v40 }
 0x184   : > { %925 = vmatmul.mubr.msk.bf16.gmra.mrb[20].mxu0 %vm592_vm10, %v989_v19 }
 0x22f   : > { %v645_v38 = vpop.f32.mrb[0].mxu0 }
 0x230   : > { %v646_v27 = vadd.f32 %v645_v38, %v505_v21  ;;  %v647_v29 = vpop.f32.mrb[1].mxu0 }
 0x231   : > { %v648_v30 = vadd.f32 %v647_v29, %v505_v21  ;;  %v649_v39 = vpop.f32.mrb[2].mxu0  ;;  %v545_v29 = vpop.permute.xlu1 %544 }
 0x232   : > { %v650_v41 = vadd.f32 %v649_v39, %v510_v22  ;;  %v651_v61 = vpop.f32.mrb[3].mxu0  ;;  %v704_v42 = vmax.f32 %v646_v27, 0.0 }
 0x233   : > { %v652_v63 = vadd.f32 %v651_v61, %v510_v22  ;;  %v705_v62 = vmax.f32 %v648_v30, 0.0 }
 0x234   : > { %v706_v44 = vmax.f32 %v650_v41, 0.0 }
 0x235   : > { %v707_v40 = vmax.f32 %v652_v63, 0.0  ;;  %v550_v63 = vpop.permute.xlu0 %549 }
 0x236   : > { %v730_v31 = vpack.c.bf16 %v706_v44, %v704_v42 }
 0x237   : > { %v655_v34 = vpop.f32.mrb[4].mxu0  ;;  %v731_v28 = vpack.c.bf16 %v707_v40, %v705_v62 }
 0x238   : > { %v656_v18 = vadd.f32 %v655_v34, %v515_v4  ;;  %v657_v24 = vpop.f32.mrb[5].mxu0 }
 0x239   : > { %v658_v45 = vadd.f32 %v657_v24, %v515_v4  ;;  %v659_v46 = vpop.f32.mrb[6].mxu0  ;;  %751 = vmatprep.subr.bf16.mxu1 %v731_v28 }
 0x23a   : > { %v660_v49 = vadd.f32 %v659_v46, %v520_v43  ;;  %v661_v53 = vpop.f32.mrb[7].mxu0  ;;  %752 = vmatpush1.bf16.msra.mxu1 %v730_v31  ;;  %v708_v55 = vmax.f32 %v656_v18, 0.0 }
 0x23b   : > { %v662_v54 = vadd.f32 %v661_v53, %v520_v43  ;;  %v709_v51 = vmax.f32 %v658_v45, 0.0  ;;  %v555_v43 = vpop.permute.xlu1 %554 }
 0x23c   : > { %v710_v47 = vmax.f32 %v660_v49, 0.0 }
 0x23d   : > { %v711_v56 = vmax.f32 %v662_v54, 0.0  ;;  %v560_v54 = vpop.permute.xlu0 %559 }
 0x23e   : > { %v732_v48 = vpack.c.bf16 %v710_v47, %v708_v55 }
 0x23f   : > { %v733_v50 = vpack.c.bf16 %v711_v56, %v709_v51  ;;  %v665_v52 = vpop.f32.mrb[8].mxu0 }
 0x240   : > { %v666_v57 = vadd.f32 %v665_v52, %v525_v35  ;;  %v667_v58 = vpop.f32.mrb[9].mxu0 }
 0x241   : > { %v668_v60 = vadd.f32 %v667_v58, %v525_v35  ;;  %v669_v5 = vpop.f32.mrb[10].mxu0  ;;  %753 = vmatprep.subr.bf16.mxu1 %v733_v50 }
 0x242   : > { %v670_v13 = vadd.f32 %v669_v5, %v530_v59  ;;  %v671_v14 = vpop.f32.mrb[11].mxu0  ;;  %754 = vmatpush1.bf16.msra.mxu1 %v732_v48  ;;  %v712_v16 = vmax.f32 %v666_v57, 0.0  ;;  %v797_v5 = vshrl.u32 %v241_v6, 7 }
 0x243   : > { %v672_v15 = vadd.f32 %v671_v14, %v530_v59  ;;  %v713_v8 = vmax.f32 %v668_v60, 0.0  ;;  %v990_v60 = vld [vmem:[%s1577_s4] sm:$0xff]  }
 0x244   : > { %v714_v17 = vmax.f32 %v670_v13, 0.0  ;;  %v798_v13 = vsub.s32 0, %v797_v5  ;;  %v794_v14 = vld [vmem:[%s239_s15] sm:$0x3] }
 0x245   : > { %v715_v9 = vmax.f32 %v672_v15, 0.0  ;;  %v802_v15 = vsub.s32 1, %v797_v5 }
 0x246   : > { %v734_v7 = vpack.c.bf16 %v714_v17, %v712_v16  ;;  %v799_v16 = vrot.slane %v794_v14, %v798_v13 }
 0x247   : > { %v735_v26 = vpack.c.bf16 %v715_v9, %v713_v8  ;;  %v675_v10 = vpop.f32.mrb[12].mxu0  ;;  %v803_v17 = vrot.slane %v794_v14, %v802_v15 }
 0x248   : > { %v676_v25 = vadd.f32 %v675_v10, %v535_v12  ;;  %v677_v23 = vpop.f32.mrb[13].mxu0 }
 0x249   : > { %v678_v11 = vadd.f32 %v677_v23, %v535_v12  ;;  %v679_v32 = vpop.f32.mrb[14].mxu0  ;;  %755 = vmatprep.subr.bf16.mxu1 %v735_v26 }
 0x24a   : > { %v680_v36 = vadd.f32 %v679_v32, %v540_v20  ;;  %v681_v37 = vpop.f32.mrb[15].mxu0  ;;  %756 = vmatpush1.bf16.msra.mxu1 %v734_v7  ;;  %v716_v19 = vmax.f32 %v676_v25, 0.0 }
 0x24b   : > { %v682_v33 = vadd.f32 %v681_v37, %v540_v20  ;;  %v717_v38 = vmax.f32 %v678_v11, 0.0 }
 0x24c   : > { %v718_v21 = vmax.f32 %v680_v36, 0.0 }
 0x24d   : > { %v719_v22 = vmax.f32 %v682_v33, 0.0 }
 0x24e   : > { %v736_v27 = vpack.c.bf16 %v718_v21, %v716_v19 }
 0x24f   : > { %v737_v30 = vpack.c.bf16 %v719_v22, %v717_v38  ;;  %v685_v39 = vpop.f32.mrb[16].mxu0 }
 0x250   : > { %v686_v41 = vadd.f32 %v685_v39, %v545_v29  ;;  %v687_v61 = vpop.f32.mrb[17].mxu0 }
 0x251   : > { %v688_v42 = vadd.f32 %v687_v61, %v545_v29  ;;  %v689_v44 = vpop.f32.mrb[18].mxu0  ;;  %757 = vmatprep.subr.bf16.mxu1 %v737_v30 }
 0x252   : > { %v690_v62 = vadd.f32 %v689_v44, %v550_v63  ;;  %v691_v40 = vpop.f32.mrb[19].mxu0  ;;  %758 = vmatpush1.bf16.msra.mxu1 %v736_v27  ;;  %v720_v31 = vmax.f32 %v686_v41, 0.0 }
 0x253   : > { %v692_v4 = vadd.f32 %v691_v40, %v550_v63  ;;  %v721_v28 = vmax.f32 %v688_v42, 0.0 }
 0x254   : > { %v722_v34 = vmax.f32 %v690_v62, 0.0 }
 0x255   : > { %v723_v18 = vmax.f32 %v692_v4, 0.0 }
 0x256   : > { %v738_v24 = vpack.c.bf16 %v722_v34, %v720_v31 }
 0x257   : > { %v739_v45 = vpack.c.bf16 %v723_v18, %v721_v28  ;;  %v695_v46 = vpop.f32.mrb[20].mxu0 }
 0x258   : > { %v696_v49 = vadd.f32 %v695_v46, %v555_v43  ;;  %v697_v53 = vpop.f32.mrb[21].mxu0 }
 0x259   : > { %v698_v55 = vadd.f32 %v697_v53, %v555_v43  ;;  %v699_v47 = vpop.f32.mrb[22].mxu0  ;;  %759 = vmatprep.subr.bf16.mxu1 %v739_v45 }
 0x25a   : > { %v700_v51 = vadd.f32 %v699_v47, %v560_v54  ;;  %v701_v56 = vpop.f32.mrb[23].mxu0  ;;  %760 = vmatpush1.bf16.msra.mxu1 %v738_v24  ;;  %v724_v35 = vmax.f32 %v696_v49, 0.0 }
 0x25b   : > { %v702_v48 = vadd.f32 %v701_v56, %v560_v54  ;;  %v725_v52 = vmax.f32 %v698_v55, 0.0 }
 0x25c   : > { %v726_v50 = vmax.f32 %v700_v51, 0.0 }
 0x25d   : > { %v727_v57 = vmax.f32 %v702_v48, 0.0 }
 0x25e   : > { %v740_v58 = vpack.c.bf16 %v726_v50, %v724_v35 }
 0x25f   : > { %v741_v59 = vpack.c.bf16 %v727_v57, %v725_v52 }
 0x261   : > { %761 = vmatprep.subr.bf16.mxu1 %v741_v59 }
 0x262   : > { %762 = vmatpush1.bf16.msra.mxu1 %v740_v58 }
 0x265   : > { %927 = vmatmul.mubr.msk.bf16.vlgmr.msra.gmra.mrb[0].mxu1 %vm747_vm11, %v990_v60 }
 0x338   : > { %v785_v8 = vpop.f32.mrb[0].mxu1 }
 0x339   : > { %v806_v9 = vmul.f32 %v799_v16, %v785_v8  ;;  %v787_v7 = vpop.f32.mrb[1].mxu1 }
 0x33a   : > { %v807_v12 = vmul.f32 %v803_v17, %v787_v7  ;;  %v789_v26 = vpop.f32.mrb[2].mxu1 }
 0x33b   : > { %v810_v6 = vadd.f32 %v806_v9, %v1152_v1  ;;  %v808_v10 = vmul.f32 %v799_v16, %v789_v26  ;;  %v791_v25 = vpop.f32.mrb[3].mxu1 }
 0x33c   : > { %v811_v23 = vadd.f32 %v807_v12, %v1150_v0  ;;  %v809_v20 = vmul.f32 %v803_v17, %v791_v25 }
 0x33d   : > { %814 = vst [vmem:[%s230_s23] sm:$0xff] %v810_v6  ;;  %v812_v11 = vadd.f32 %v808_v10, %v1160_v3 }
 0x33e   : > { %815 = vst [vmem:[%s230_s23 + $0x8] sm:$0xff] %v811_v23  ;;  %v813_v32 = vadd.f32 %v809_v20, %v1158_v2 }
 0x33f   : > { %816 = vst [vmem:[%s230_s23 + $0x10] sm:$0xff] %v812_v11 }
 0x340   : > { %817 = vst [vmem:[%s230_s23 + $0x18] sm:$0xff] %v813_v32 }
 0x341   : > { %1004 = shalt.err (!%p1001_p3)
}
 0x342   : > { %s1005_s13 = scalar_lea.hbm %s1529_s7, 512  ;;  %s1009_s16 = scalar_lea.hbm %s1578_s5, 1024 }
 0x343   : > { %p1006_p4 = scmp.ne.s32.totalorder %s1529_s7, %s1005_s13  ;;  %p1010_p9 = scmp.lt.u32.totalorder %s1529_s7, %s1578_s5 }
 0x344   : > { %p1011_p10 = scmp.lt.u32.totalorder %s1009_s16, %s1005_s13  ;;  %p1013_p12 = scmp.lt.u32.totalorder %s1005_s13, %s1529_s7 }
 0x345   : > { %p1007_p7 = pnand %p1006_p4, %p1132_p5 }
 0x346   : > { %p1012_p11 = por %p1011_p10, %p1010_p9 }
 0x347   : > { %p1008_p8 = pneg %p1007_p7 }
 0x348   : > { %p1014_p13 = por %p1013_p12, %p1012_p11 }
 0x34a   : > { %p1015_p0 = pnand %p1014_p13, %p1008_p8 }
 0x34c   : > { %1018 = shalt.err (!%p1015_p0)
}
 0x34d   : > { %s1063_s30 = smov 256  }
 0x34e   : > { %935 = dma.vmem_to_hbm [thread:$0]  (%p1132_p5), %s1522_s25, 512, %s1529_s7, %s1531_s22, %s1063_s30, %s1063_s30, %s1055_s10  }
 0x34f PF: > { %p941_p1 = scmp.ge.s32.totalorder %s1053_s21, 2  ;;  %s847_s26 = sand.u32 1, %s1041_s18  }
 0x350   : > { %s848_s6 = scalar_lea.sflag [#allocation3], %s847_s26 }
 0x351   : > { %p938_p2 = pnand %p941_p1, %p1136_p6 }
 0x353   : > { %1036 = dma.done.wait (!%p938_p2), %s848_s6, 512  }
 0x354   : > { %1038 = vsyncadd (!%p938_p2), %s848_s6, 4294966784  ;;  %p15_p3 = scmp.ge.s32.totalorder %s1119_s24, 4   ;;  %s1589_s18 = smov %s1045_s19 }
 0x355   : > { %s1590_s19 = smov %s1049_s20  ;;  %s1591_s20 = smov %s1130_s27 }
 0x356   : > { %s1592_s21 = smov %s1119_s24  ;;  %17 = sbr.rel (!%p15_p3) target bundleno = 3 (0x3), region = 78 }
 0x35d   :  { %853 = vsyncpa [#allocation3], 1 }
 0x35e   :  { %855 = vsyncpa [#allocation3 + $0x1], 1 }

</bundles_post_ra>
